<compile_context>
chip_gen: v5e
topology: v5e:2x2
jax: 0.10.0
libtpu: 0.0.40
codegen_flags: <defaults>
</compile_context>

<pallas_src>
import functools

import jax
import jax.numpy as jnp
from jax import lax
from jax.experimental import pallas as pl
from jax.experimental.pallas import tpu as pltpu

EPS = 1e-5
LANE = 128
VMEM_LIMIT = 32 * 1024 * 1024  # safe scoped-VMEM request on v5e/v6e/v7x


def _round_up(x, m):
    return (x + m - 1) // m * m


def _cparams():
    return pltpu.CompilerParams(dimension_semantics=("parallel",),
                                vmem_limit_bytes=VMEM_LIMIT)


# ----------------------------- Pallas kernels ------------------------------

def _conv_bn_stats_kernel(*refs, kh, kw, ho, wo, fuse_bn_relu):
    """One whole image per grid step.

    Optionally applies bn+ReLU (+ 1px zero halo) to the input, then computes a
    KHxKW conv as a single MXU contraction, plus per-sample BN (sum, sumsq).

    refs (fuse_bn_relu=True):  x, scale, bias, w, out, sum, sumsq
    refs (fuse_bn_relu=False): x, w, out, sum, sumsq
      x   : (1, Hin, Win, C)  input block; carries the 1px halo when kh/kw > 1
                              and fuse_bn_relu is False.
      w   : (kh*kw*C, Cp)     reshaped / channel-padded weights (bf16)
      out : (1, Ho, Wo, Cp)   raw conv output (bf16)
      sum/sumsq : (1, 1, Cp)  per-sample channel sums of the f32 conv output
    """
    if fuse_bn_relu:
        x_ref, s_ref, b_ref, w_ref, out_ref, sum_ref, sq_ref = refs
    else:
        x_ref, w_ref, out_ref, sum_ref, sq_ref = refs

    x = x_ref[...]
    if fuse_bn_relu:
        # bn1 + ReLU fused into conv2's input path.  The zero halo is added
        # AFTER bn+relu (matches F.relu(bn1(conv1)) followed by padded conv2).
        x = jnp.maximum(x.astype(jnp.float32) * s_ref[...] + b_ref[...], 0.0)
        if kh > 1 or kw > 1:
            c = x.shape[-1]
            zr = jnp.zeros((1, 1, wo, c), x.dtype)
            x = jnp.concatenate([zr, x, zr], axis=1)          # H halo
            zc = jnp.zeros((1, ho + 2, 1, c), x.dtype)
            x = jnp.concatenate([zc, x, zc], axis=2)          # W halo

    if kh == 1 and kw == 1:
        patches = x                                           # taps pre-packed
    else:
        # Fold all KH*KW taps into the contraction dim (in-kernel im2col).
        patches = jnp.concatenate(
            [x[:, i:i + ho, j:j + wo, :] for i in range(kh) for j in range(kw)],
            axis=-1)                                          # (1,Ho,Wo,kh*kw*C)

    k = patches.shape[-1]
    lhs = patches.reshape(ho * wo, k).astype(jnp.bfloat16)
    acc = jnp.dot(lhs, w_ref[...], preferred_element_type=jnp.float32)  # MXU

    cp = acc.shape[-1]
    out_ref[...] = acc.reshape(1, ho, wo, cp).astype(out_ref.dtype)
    sum_ref[...] = jnp.sum(acc, axis=0, keepdims=True).reshape(1, 1, cp)
    sq_ref[...] = jnp.sum(acc * acc, axis=0, keepdims=True).reshape(1, 1, cp)


def _bn_add_relu_kernel(*refs, project):
    """out = relu(bn2(conv2) + shortcut); shortcut gets its own BN if projecting."""
    if project:
        c_ref, r_ref, s_ref, b_ref, ss_ref, bs_ref, o_ref = refs
    else:
        c_ref, r_ref, s_ref, b_ref, o_ref = refs
    y = c_ref[...].astype(jnp.float32) * s_ref[...] + b_ref[...]
    r = r_ref[...].astype(jnp.float32)
    if project:
        r = r * ss_ref[...] + bs_ref[...]
    o_ref[...] = jnp.maximum(y + r, 0.0)


# ----------------------------- pallas wrappers ------------------------------

def conv_bn_stats(x, w, *, kh, kw, ho, wo, scale=None, bias=None):
    """Raw conv (+ optional fused bn+ReLU on the input) + per-sample BN stats."""
    n, hin, win, cin = x.shape
    cp = w.shape[-1]
    fuse = scale is not None
    kernel = functools.partial(_conv_bn_stats_kernel, kh=kh, kw=kw, ho=ho, wo=wo,
                               fuse_bn_relu=fuse)
    x_spec = pl.BlockSpec((1, hin, win, cin), lambda nn: (nn, 0, 0, 0))
    w_spec = pl.BlockSpec(w.shape, lambda nn: (0, 0))
    vec_spec = pl.BlockSpec((1, cp), lambda nn: (0, 0))
    in_specs, args = [x_spec], [x]
    if fuse:
        in_specs += [vec_spec, vec_spec]
        args += [scale, bias]
    in_specs.append(w_spec)
    args.append(w)
    out_shape = (jax.ShapeDtypeStruct((n, ho, wo, cp), jnp.bfloat16),
                 jax.ShapeDtypeStruct((n, 1, cp), jnp.float32),
                 jax.ShapeDtypeStruct((n, 1, cp), jnp.float32))
    out_specs = (pl.BlockSpec((1, ho, wo, cp), lambda nn: (nn, 0, 0, 0)),
                 pl.BlockSpec((1, 1, cp), lambda nn: (nn, 0, 0)),
                 pl.BlockSpec((1, 1, cp), lambda nn: (nn, 0, 0)))
    return pl.pallas_call(
        kernel, grid=(n,), in_specs=in_specs, out_specs=out_specs,
        out_shape=out_shape, compiler_params=_cparams())(*args)


def bn_add_relu(conv2, res, scale2, bias2, scale_sc=None, bias_sc=None):
    """relu(BN(conv2) + shortcut); shortcut gets its own BN when projecting."""
    n, ho, wo, cp = conv2.shape
    project = scale_sc is not None
    kernel = functools.partial(_bn_add_relu_kernel, project=project)
    img_spec = pl.BlockSpec((1, ho, wo, cp), lambda nn: (nn, 0, 0, 0))
    vec_spec = pl.BlockSpec((1, cp), lambda nn: (0, 0))
    in_specs = [img_spec, img_spec, vec_spec, vec_spec]
    args = [conv2, res, scale2, bias2]
    if project:
        in_specs += [vec_spec, vec_spec]
        args += [scale_sc, bias_sc]
    return pl.pallas_call(
        kernel, grid=(n,), in_specs=in_specs, out_specs=img_spec,
        out_shape=jax.ShapeDtypeStruct((n, ho, wo, cp), jnp.float32),
        compiler_params=_cparams())(*args)


# -------------------------------- JAX glue ----------------------------------

def _prep_weight(w_oihw, cp, c_in_pad=None):
    """(O, I, KH, KW) -> (KH*KW*I_pad, Cp) bf16, channel-padded with zeros."""
    c_out, c_in, kh, kw = w_oihw.shape
    wt = jnp.transpose(w_oihw, (2, 3, 1, 0)).astype(jnp.float32)
    cin_p = c_in if c_in_pad is None else c_in_pad
    wt = jnp.pad(wt, ((0, 0), (0, 0), (0, cin_p - c_in), (0, cp - c_out)))
    return wt.reshape(kh * kw * cin_p, cp).astype(jnp.bfloat16)


def _gather_taps(x_pad, kh, kw, stride, ho, wo):
    """Host-side tap pack for strided / tiny-Cin convs -> (N, Ho, Wo, kh*kw*Cin)."""
    n, _, _, c = x_pad.shape
    pieces = []
    for i in range(kh):
        for j in range(kw):
            pieces.append(lax.slice(
                x_pad, (0, i, j, 0),
                (n, i + (ho - 1) * stride + 1, j + (wo - 1) * stride + 1, c),
                (1, stride, stride, 1)))
    return jnp.concatenate(pieces, axis=-1)


def _pad_vec(v, cp):
    # NOTE: pads with 0 (including gamma) so lane-padded channels get
    # scale = bias = 0 and stay exactly zero downstream.
    v = v.reshape(1, -1).astype(jnp.float32)
    return jnp.pad(v, ((0, 0), (0, cp - v.shape[1])))


def _bn_scale_bias(sums, sqs, count, gamma, beta, cp):
    """Fold per-sample (sum, sumsq) partials into per-channel scale / bias."""
    total = jnp.sum(sums, axis=0)                 # (1, Cp)
    total_sq = jnp.sum(sqs, axis=0)
    mean = total / count
    var = jnp.maximum(total_sq / count - mean * mean, 0.0)   # biased (training BN)
    scale = _pad_vec(gamma, cp) * lax.rsqrt(var + EPS)
    bias = _pad_vec(beta, cp) - mean * scale
    return scale, bias


def residual_block_forward(x_nchw, params, stride):
    """Pallas implementation of ResidualBlock.forward (NCHW in / NCHW out)."""
    n, c_in, h, w = x_nchw.shape
    c_out = params["conv1_w"].shape[0]
    cp = _round_up(c_out, LANE)
    ho = (h + 2 - 3) // stride + 1
    wo = (w + 2 - 3) // stride + 1
    count = n * ho * wo

    x = jnp.transpose(x_nchw, (0, 2, 3, 1)).astype(jnp.float32)   # NHWC

    # ---- conv1 (3x3, stride) + bn1 stats ------------------------------------
    w1 = _prep_weight(params["conv1_w"], cp)
    if stride == 1 and c_in % LANE == 0:
        # lane-aligned channels: single halo'd read, taps folded in-kernel
        x1 = jnp.pad(x, ((0, 0), (1, 1), (1, 1), (0, 0))).astype(jnp.bfloat16)
        conv1, s1, q1 = conv_bn_stats(x1, w1, kh=3, kw=3, ho=ho, wo=wo)
    else:
        # strided or tiny Cin: pre-pack taps so K = 9*Cin and loads are lane-dense
        x_pad = jnp.pad(x, ((0, 0), (1, 1), (1, 1), (0, 0)))
        x1 = _gather_taps(x_pad, 3, 3, stride, ho, wo).astype(jnp.bfloat16)
        conv1, s1, q1 = conv_bn_stats(x1, w1, kh=1, kw=1, ho=ho, wo=wo)
    scale1, bias1 = _bn_scale_bias(s1, q1, count,
                                   params["bn1_gamma"], params["bn1_beta"], cp)

    # ---- conv2 (3x3, stride 1), bn1+ReLU fused into its input path ----------
    w2 = _prep_weight(params["conv2_w"], cp, c_in_pad=cp)
    conv2, s2, q2 = conv_bn_stats(conv1, w2, kh=3, kw=3, ho=ho, wo=wo,
                                  scale=scale1, bias=bias1)
    scale2, bias2 = _bn_scale_bias(s2, q2, count,
                                   params["bn2_gamma"], params["bn2_beta"], cp)

    # ---- shortcut ------------------------------------------------------------
    if stride != 1 or c_in != c_out:
        wsc = _prep_weight(params["sc_w"], cp)               # 1x1 conv, stride s
        xsc = x[:, ::stride, ::stride, :].astype(jnp.bfloat16)
        conv_sc, ss, qs = conv_bn_stats(xsc, wsc, kh=1, kw=1, ho=ho, wo=wo)
        scale_sc, bias_sc = _bn_scale_bias(ss, qs, count, params["bn_sc_gamma"],
                                           params["bn_sc_beta"], cp)
        out = bn_add_relu(conv2, conv_sc, scale2, bias2, scale_sc, bias_sc)
    else:
        res = jnp.pad(x, ((0, 0), (0, 0), (0, 0), (0, cp - c_in)))
        out = bn_add_relu(conv2, res, scale2, bias2)

    return jnp.transpose(out[..., :c_out], (0, 3, 1, 2))


# --------------------------- pure-JAX f32 reference --------------------------

def _ref_conv(x, w, stride, pad):
    return lax.conv_general_dilated(
        x, w, (stride, stride), [(pad, pad), (pad, pad)],
        dimension_numbers=("NCHW", "OIHW", "NCHW"))


def _ref_bn(x, gamma, beta):
    mean = x.mean(axis=(0, 2, 3), keepdims=True)
    var = ((x - mean) ** 2).mean(axis=(0, 2, 3), keepdims=True)
    return ((x - mean) * lax.rsqrt(var + EPS) * gamma.reshape(1, -1, 1, 1)
            + beta.reshape(1, -1, 1, 1))


def residual_block_reference(x, params, stride):
    c_in = x.shape[1]
    c_out = params["conv1_w"].shape[0]
    out = jax.nn.relu(_ref_bn(_ref_conv(x, params["conv1_w"], stride, 1),
                              params["bn1_gamma"], params["bn1_beta"]))
    out = _ref_bn(_ref_conv(out, params["conv2_w"], 1, 1),
                  params["bn2_gamma"], params["bn2_beta"])
    if stride != 1 or c_in != c_out:
        sc = _ref_bn(_ref_conv(x, params["sc_w"], stride, 0),
                     params["bn_sc_gamma"], params["bn_sc_beta"])
    else:
        sc = x
    return jax.nn.relu(out + sc)


# -------------------------------- param init ---------------------------------

def make_params(key, c_in, c_out, stride):
    ks = jax.random.split(key, 8)
    params = {
        "conv1_w": 0.1 * jax.random.normal(ks[0], (c_out, c_in, 3, 3), jnp.float32),
        "bn1_gamma": 1.0 + 0.1 * jax.random.normal(ks[1], (c_out,), jnp.float32),
        "bn1_beta": 0.05 * jax.random.normal(ks[2], (c_out,), jnp.float32),
        "conv2_w": 0.1 * jax.random.normal(ks[3], (c_out, c_out, 3, 3), jnp.float32),
        "bn2_gamma": 1.0 + 0.1 * jax.random.normal(ks[4], (c_out,), jnp.float32),
        "bn2_beta": 0.05 * jax.random.normal(ks[5], (c_out,), jnp.float32),
    }
    if stride != 1 or c_in != c_out:
        params["sc_w"] = 0.1 * jax.random.normal(ks[6], (c_out, c_in, 1, 1), jnp.float32)
        params["bn_sc_gamma"] = 1.0 + 0.1 * jax.random.normal(ks[7], (c_out,), jnp.float32)
        params["bn_sc_beta"] = jnp.zeros((c_out,), jnp.float32)
    return params


# ----------------------------------- main -------------------------------------

if __name__ == "__main__":
    key = jax.random.PRNGKey(0)
    k_x1, k_p1, k_x2, k_p2 = jax.random.split(key, 4)

    # Tolerance: MXU operands and the stored conv intermediates are bf16 (per
    # the perf review), while the reference is pure f32; two chained convs +
    # batch-norm re-normalization put the worst-element error in the few-e-2
    # range for O(1) outputs.
    RTOL = ATOL = 5e-2

    # Case 1: downsampling block (stride=2, channel change) -> conv shortcut.
    x1 = jax.random.normal(k_x1, (2, 4, 16, 16), jnp.float32)
    params1 = make_params(k_p1, c_in=4, c_out=8, stride=2)
    out1 = jax.block_until_ready(residual_block_forward(x1, params1, stride=2))
    ref1 = residual_block_reference(x1, params1, stride=2)
    assert out1.shape == (2, 8, 8, 8)
    assert jnp.allclose(out1, ref1, rtol=RTOL, atol=ATOL), "mismatch (stride=2)"

    # Case 2: identity-shortcut block (stride=1, same channels).
    x2 = jax.random.normal(k_x2, (2, 8, 16, 16), jnp.float32)
    params2 = make_params(k_p2, c_in=8, c_out=8, stride=1)
    out2 = jax.block_until_ready(residual_block_forward(x2, params2, stride=1))
    ref2 = residual_block_reference(x2, params2, stride=1)
    assert out2.shape == (2, 8, 16, 16)
    assert jnp.allclose(out2, ref2, rtol=RTOL, atol=ATOL), "mismatch (stride=1)"

    print("KERNEL_OK")
</pallas_src>

<mosaic_0001>
module attributes {stable_mosaic.version = 11 : i64} {
  func.func @_conv_bn_stats_kernel(%arg0: i32, %arg1: memref<1x8x8x36xbf16, #tpu.memory_space<vmem>>, %arg2: memref<36x128xbf16, #tpu.memory_space<vmem>>, %arg3: memref<1x8x8x128xbf16, #tpu.memory_space<vmem>>, %arg4: memref<1x1x128xf32, #tpu.memory_space<vmem>>, %arg5: memref<1x1x128xf32, #tpu.memory_space<vmem>>) attributes {dimension_semantics = [#tpu.dimension_semantics<parallel>], iteration_bounds = array<i64: 2>, scalar_prefetch = 0 : i64, scratch_operands = 0 : i64, tpu.core_type = #tpu.core_type<tc>, window_params = [{transform_indices = @transform_0, window_bounds = array<i64: 1, 8, 8, 36>}, {pipeline_mode = #tpu.pipeline_mode<synchronous>, transform_indices = @transform_1, window_bounds = array<i64: 36, 128>}, {transform_indices = @transform_2, window_bounds = array<i64: 1, 8, 8, 128>}, {transform_indices = @transform_3, window_bounds = array<i64: 1, 1, 128>}, {transform_indices = @transform_4, window_bounds = array<i64: 1, 1, 128>}]} {
    %c0 = arith.constant 0 : index
    %c0_0 = arith.constant 0 : index
    %c0_1 = arith.constant 0 : index
    %c0_2 = arith.constant 0 : index
    %0 = vector.load %arg1[%c0, %c0_0, %c0_1, %c0_2] : memref<1x8x8x36xbf16, #tpu.memory_space<vmem>>, vector<1x8x8x36xbf16>
    %1 = vector.shape_cast %0 : vector<1x8x8x36xbf16> to vector<64x36xbf16>
    %c0_3 = arith.constant 0 : index
    %c0_4 = arith.constant 0 : index
    %2 = vector.load %arg2[%c0_3, %c0_4] : memref<36x128xbf16, #tpu.memory_space<vmem>>, vector<36x128xbf16>
    %cst = arith.constant dense<0.000000e+00> : vector<64x128xf32>
    %3 = tpu.matmul %1, %2, %cst {dimension_numbers = #tpu.dot_dimension_numbers<[1], [0], [0], [1], [0, 0, 1, 1], [], []>} : vector<64x36xbf16>, vector<36x128xbf16>, vector<64x128xf32> -> vector<64x128xf32>
    %4 = vector.shape_cast %3 : vector<64x128xf32> to vector<1x8x8x128xf32>
    %5 = arith.truncf %4 : vector<1x8x8x128xf32> to vector<1x8x8x128xbf16>
    %c0_5 = arith.constant 0 : index
    %c0_6 = arith.constant 0 : index
    %c0_7 = arith.constant 0 : index
    %c0_8 = arith.constant 0 : index
    %6 = vector.load %arg3[%c0_5, %c0_6, %c0_7, %c0_8] : memref<1x8x8x128xbf16, #tpu.memory_space<vmem>>, vector<1x8x8x128xbf16>
    tpu.vector_store %arg3[%c0_5, %c0_6, %c0_7, %c0_8], %5 {strides = array<i32>} : memref<1x8x8x128xbf16, #tpu.memory_space<vmem>>, vector<1x8x8x128xbf16>,
    %cst_9 = arith.constant dense<0.000000e+00> : vector<128xf32>
    %7 = vector.multi_reduction <add>, %3, %cst_9 [0] : vector<64x128xf32> to vector<128xf32>
    %8 = vector.shape_cast %7 : vector<128xf32> to vector<1x128xf32>
    %9 = vector.shape_cast %8 : vector<1x128xf32> to vector<1x1x128xf32>
    %c0_10 = arith.constant 0 : index
    %c0_11 = arith.constant 0 : index
    %c0_12 = arith.constant 0 : index
    %10 = vector.load %arg4[%c0_10, %c0_11, %c0_12] : memref<1x1x128xf32, #tpu.memory_space<vmem>>, vector<1x1x128xf32>
    tpu.vector_store %arg4[%c0_10, %c0_11, %c0_12], %9 {strides = array<i32>} : memref<1x1x128xf32, #tpu.memory_space<vmem>>, vector<1x1x128xf32>,
    %11 = arith.mulf %3, %3 : vector<64x128xf32>
    %cst_13 = arith.constant dense<0.000000e+00> : vector<128xf32>
    %12 = vector.multi_reduction <add>, %11, %cst_13 [0] : vector<64x128xf32> to vector<128xf32>
    %13 = vector.shape_cast %12 : vector<128xf32> to vector<1x128xf32>
    %14 = vector.shape_cast %13 : vector<1x128xf32> to vector<1x1x128xf32>
    %c0_14 = arith.constant 0 : index
    %c0_15 = arith.constant 0 : index
    %c0_16 = arith.constant 0 : index
    %15 = vector.load %arg5[%c0_14, %c0_15, %c0_16] : memref<1x1x128xf32, #tpu.memory_space<vmem>>, vector<1x1x128xf32>
    tpu.vector_store %arg5[%c0_14, %c0_15, %c0_16], %14 {strides = array<i32>} : memref<1x1x128xf32, #tpu.memory_space<vmem>>, vector<1x1x128xf32>,
    return
  }
  func.func @transform_0(%arg0: i32) -> (i32, i32, i32, i32) {
    %c0_i32 = arith.constant 0 : i32
    %c0_i32_0 = arith.constant 0 : i32
    %c0_i32_1 = arith.constant 0 : i32
    %c0_i32_2 = arith.constant 0 : i32
    return %arg0, %c0_i32, %c0_i32_0, %c0_i32_1 : i32, i32, i32, i32
  }
  func.func @transform_1(%arg0: i32) -> (i32, i32) {
    %c0_i32 = arith.constant 0 : i32
    %c0_i32_0 = arith.constant 0 : i32
    %c0_i32_1 = arith.constant 0 : i32
    return %c0_i32, %c0_i32_0 : i32, i32
  }
  func.func @transform_2(%arg0: i32) -> (i32, i32, i32, i32) {
    %c0_i32 = arith.constant 0 : i32
    %c0_i32_0 = arith.constant 0 : i32
    %c0_i32_1 = arith.constant 0 : i32
    %c0_i32_2 = arith.constant 0 : i32
    return %arg0, %c0_i32, %c0_i32_0, %c0_i32_1 : i32, i32, i32, i32
  }
  func.func @transform_3(%arg0: i32) -> (i32, i32, i32) {
    %c0_i32 = arith.constant 0 : i32
    %c0_i32_0 = arith.constant 0 : i32
    %c0_i32_1 = arith.constant 0 : i32
    return %arg0, %c0_i32, %c0_i32_0 : i32, i32, i32
  }
  func.func @transform_4(%arg0: i32) -> (i32, i32, i32) {
    %c0_i32 = arith.constant 0 : i32
    %c0_i32_0 = arith.constant 0 : i32
    %c0_i32_1 = arith.constant 0 : i32
    return %arg0, %c0_i32, %c0_i32_0 : i32, i32, i32
  }
}

</mosaic_0001>

<bundles_post_ra>
// kernel: tpu_custom_call.1
= control target key start
LH: loop header
LB: loop body
LE: loop exit
PB: predicated region body
PF: predicated region fallthrough
CT: control target
= control target key end

     0   :  { %10 = vsyncpa [#allocation3], 0  ;;  %s1165_s0 = inlined_call_operand.hbm [shape: bf16[2,8,8,36], index: 0, kind: input, shape index: {}]   ;;  %s1166_s1 = inlined_call_operand.hbm [shape: bf16[36,128], index: 1, kind: input, shape index: {}]   ;;  %s1167_s2 = inlined_call_operand.hbm [shape: bf16[2,8,8,128], index: 2, kind: output, shape index: {0}]   ;;  %s1168_s3 = inlined_call_operand.hbm [shape: f32[2,1,128], index: 3, kind: output, shape index: {1}]   ;;  %s1169_s4 = inlined_call_operand.hbm [shape: f32[2,1,128], index: 4, kind: output, shape index: {2}]  }
   0x1   :  { %12 = vsyncpa [#allocation3 + $0x1], 0 }
   0x2   :  { %13 = vsyncpa [#allocation6], 0 }
   0x3   :  { %14 = vsyncpa [#allocation4], 0 }
   0x4   :  { %16 = vsyncpa [#allocation4 + $0x1], 0 }
   0x5   :  { %17 = vsyncpa [#allocation9], 0 }
   0x6   :  { %19 = vsyncpa [#allocation9 + $0x1], 0  ;;  %s961_s15 = smov 0   ;;  %s963_s16 = smov 0  }
   0x7   :  { %s965_s17 = smov 0   ;;  %s967_s18 = smov 0  }
   0x8 LB: > { %s982_s19 = sadd.s32 4294967295, %s929_s18   ;;  %s1170_s20 = sadd.s32 4294967294, %s929_s18   ;;  %s929_s18 = sphi %s967_s18, %s1181_s18   ;;  %s925_s17 = sphi %s965_s17, %s1180_s17   ;;  %s921_s16 = sphi %s963_s16, %s1179_s16   ;;  %s917_s15 = sphi %s961_s15, %s1178_s15  }
   0x9   : > { %p45_p0 = scmp.ne.s32.totalorder %s921_s16, %s917_s15  ;;  %p46_p1 = scmp.eq.s32.totalorder %s982_s19, 0 }
   0xa   : > { %p90_p2 = scmp.eq.s32.totalorder %s982_s19, 1  ;;  %p96_p3 = scmp.eq.s32.totalorder %s1170_s20, 1 }
   0xb   : > { %p993_p4 = por %p46_p1, %p45_p0  ;;  %p585_p5 = scmp.ge.s32.totalorder %s929_s18, 1 }
   0xc   : > { %p998_p6 = por %p96_p3, %p45_p0  ;;  %p155_p7 = scmp.lt.s32.totalorder %s929_s18, 3 }
   0xd   : > { %s166_s25 = sshll.u32 %s1166_s1, 4  ;;  %s931_s27 = smov [#allocation5]   ;;  %s167_s25 = int_to_ptr.hbm [resolvable:$true] %s166_s25 }
   0xe   : > { %p1006_p8 = pnand %p585_p5, %p155_p7  ;;  %s168_s28 = sshll.u32 %s931_s27, 4  ;;  %s169_s28 = int_to_ptr.vmem [resolvable:$true] %s168_s28 }
   0xf   : > { %s1016_s29 = sadd.s32 1, %s929_s18   ;;  %s932_s30 = smov 64  }
  0x10   : > { %p680_p9 = pneg %p1006_p8  ;;  %s933_s5 = smov 4  }
  0x11   : > { %s29_s6 = ssub.s32 %s929_s18, %s1016_s29  ;;  %s32_s7 = sadd.s32 1, %s925_s17 }
  0x12   : > { %p681_p10 = pnand %p680_p9, %p46_p1  ;;  %p30_p12 = scmp.eq.s32.totalorder %s29_s6, 0 }
  0x13   : > { %p39_p13 = scmp.ne.s32.totalorder %s925_s17, %s921_s16  ;;  %p40_p0 = scmp.eq.s32.totalorder %s929_s18, 0 }
  0x14   : > { %683 = dma.hbm_to_vmem [thread:$0]  (!%p681_p10), %s167_s25, 320, %s169_s28, [#allocation6], %s932_s30, %s932_s30, %s933_s5  }
  0x15   : > { %s1028_s8 = scalar_select %p30_p12, %s925_s17, %s32_s7  }
  0x16   : > { %p1032_p3 = por %p90_p2, %p39_p13  ;;  %p699_p5 = scmp.lt.s32.totalorder %s929_s18, 2 }
  0x17   : > { %s182_s10 = sand.u32 1, %s925_s17   ;;  %s628_s11 = sshll.u32 %s929_s18, 5 }
  0x18   : > { %p41_p7 = por %p40_p0, %p39_p13  ;;  %s588_s12 = sshll.u32 %s182_s10, 5 }
  0x19   : > { %s191_s23 = scalar_lea.hbm %s1165_s0, %s628_s11  ;;  %s186_s25 = scalar_lea.vmem [#allocation2], %s588_s12 }
  0x1a   : > { %s192_s24 = sshll.u32 %s191_s23, 4  ;;  %s194_s27 = sshll.u32 %s186_s25, 4  ;;  %s193_s24 = int_to_ptr.hbm [resolvable:$true] %s192_s24  ;;  %s195_s27 = int_to_ptr.vmem [resolvable:$true] %s194_s27 }
  0x1b   : > { %p1042_p9 = pnand %p699_p5, %p41_p7  ;;  %s183_s6 = scalar_lea.sflag [#allocation3], %s182_s10 }
  0x1c   : > { %s769_s7 = sshra.s32 %s193_s24, 4  ;;  %s776_s12 = scalar_lea.hbm %s1165_s0, 64  ;;  %s770_s7 = int_to_ptr.hbm [resolvable:$true] %s769_s7 }
  0x1d   : > { %s771_s20 = scalar_lea.hbm %s770_s7, 32  ;;  %p773_p10 = pneg %p1042_p9 }
  0x1e   : > { %p772_p2 = scmp.ne.s32.totalorder %s770_s7, %s771_s20  ;;  %p777_p0 = scmp.lt.s32.totalorder %s770_s7, %s1165_s0 }
  0x1f   : > { %p778_p5 = scmp.lt.s32.totalorder %s776_s12, %s771_s20 }
  0x20   : > { %p774_p12 = pnand %p773_p10, %p772_p2 }
  0x21   : > { %p779_p7 = por %p778_p5, %p777_p0 }
  0x22   : > { %p775_p13 = pneg %p774_p12 }
  0x24   : > { %p780_p11 = pnand %p779_p7, %p775_p13 }
  0x26   : > { %783 = shalt.err (!%p780_p11)
}
  0x27   : > { %687 = dma.hbm_to_vmem [thread:$0]  (!%p1042_p9), %s193_s24, 512, %s195_s27, %s183_s6, %s932_s30, %s932_s30, %s933_s5  }
  0x28   : > { %206 = sbr.rel (%p1006_p8) target bundleno = 242 (0xf2), region = 28  ;;  %s1062_s10 = sand.u32 (!%p1006_p8), 1, %s921_s16  }
  0x29   : > { %s592_s20 = sshll.u32 (!%p1006_p8), %s1062_s10, 5  ;;  %s209_s25 = scalar_lea.sflag (!%p1006_p8), [#allocation3], %s1062_s10 }
  0x2a   : > { %s212_s7 = scalar_lea.vmem (!%p1006_p8), [#allocation2], %s592_s20 }
  0x2d   : > { %900 = dma.done.wait (%p993_p4), %s209_s25, 512  }
  0x2e   : > { %902 = vsyncadd (%p993_p4), %s209_s25, 4294966784 }
  0x2f   : > { %904 = dma.done.wait (%p46_p1), [#allocation6], 320  }
  0x30   : > { %906 = vsyncadd (%p46_p1), [#allocation6], 4294966976  ;;  %v264_v0 = vld [vmem:[#allocation5 + $0x10] sm:$0x3]  ;;  %vm313_vm0 = vcmask 1041408   ;;  %v634_v4 = vld [vmem:[#allocation5 + $0x8] sm:$0xff] }
  0x31   : > { %v294_v1 = vunpack.c.l.b16 %v264_v0  ;;  %v633_v5 = vld [vmem:[#allocation5] sm:$0xff]  ;;  %v630_v7 = vld [vmem:[%s212_s7 + $0x8] sm:$0xff]  ;;  %vm300_vm1 = vcmask 293888   ;;  %v631_v8 = vld [vmem:[%s212_s7 + $0x10] sm:$0xff]  ;;  %s635_s21 = sshll.u32 %s982_s19, 5  ;;  %s238_s26 = scalar_lea.vmem [#allocation7], %s592_s20 }
  0x32   : > { %v629_v6 = vld [vmem:[%s212_s7] sm:$0xff]  ;;  %v632_v9 = vld [vmem:[%s212_s7 + $0x18] sm:$0xff]  ;;  %s418_s24 = scalar_lea.hbm %s1167_s2, %s635_s21  ;;  %s419_s27 = sshll.u32 %s238_s26, 4  ;;  %s1082_s27 = int_to_ptr.vmem [resolvable:$true] %s419_s27 }
  0x33   : > { %v297_v2 = vpack.c.b16 %v294_v1, %v294_v1  ;;  %s421_s28 = sshll.u32 %s418_s24, 4  ;;  %s399_s6 = scalar_lea.sflag [#allocation4], %s1062_s10  ;;  %s422_s28 = int_to_ptr.hbm [resolvable:$true] %s421_s28 }
  0x34   : > { %s813_s11 = sshra.s32 %s422_s28, 4  ;;  %s819_s23 = scalar_lea.hbm %s1167_s2, 64  ;;  %s814_s11 = int_to_ptr.hbm [resolvable:$true] %s813_s11 }
  0x35   : > { %v315_v3 = vsel %vm313_vm0, %v297_v2, 0  ;;  %s815_s13 = scalar_lea.hbm %s814_s11, 32  ;;  %p820_p11 = scmp.lt.s32.totalorder %s814_s11, %s1167_s2 }
  0x36   : > { %322 = vmatpush.bf16.msra.mxu0 %v315_v3  ;;  %659 = vmatpush.bf16.msra.mxu1 %v315_v3  ;;  %p816_p1 = scmp.ne.s32.totalorder %s814_s11, %s815_s13  ;;  %p821_p9 = scmp.lt.s32.totalorder %s819_s23, %s815_s13 }
  0x37   : > { %660 = vmatpush.bf16.msra.mxu2 %v315_v3  ;;  %661 = vmatpush.bf16.msra.mxu3 %v315_v3 }
  0x38   : > { %p817_p4 = pnand %p816_p1, %p1032_p3  ;;  %p822_p2 = por %p821_p9, %p820_p11 }
  0x3a   : > { %323 = vmatpush.bf16.msra.mxu0 %v634_v4  ;;  %662 = vmatpush.bf16.msra.mxu1 %v634_v4  ;;  %p818_p8 = pneg %p817_p4 }
  0x3b   : > { %663 = vmatpush.bf16.msra.mxu2 %v634_v4  ;;  %664 = vmatpush.bf16.msra.mxu3 %v634_v4 }
  0x3c   : > { %p823_p10 = pnand %p822_p2, %p818_p8 }
  0x3e   : > { %324 = vmatpush.bf16.msra.mxu0 %v633_v5  ;;  %665 = vmatpush.bf16.msra.mxu1 %v633_v5 }
  0x3f   : > { %666 = vmatpush.bf16.msra.mxu2 %v633_v5  ;;  %667 = vmatpush.bf16.msra.mxu3 %v633_v5 }
  0x41   : > { %619 = vmatmul.msk.bf16.vlgmr.msra.gmra.mxu0 %vm300_vm1, %v629_v6  ;;  %620 = vmatmul.msk.bf16.vlgmr.msra.gmra.mxu1 %vm300_vm1, %v630_v7 }
  0x42   : > { %621 = vmatmul.msk.bf16.vlgmr.msra.gmra.mxu2 %vm300_vm1, %v631_v8  ;;  %622 = vmatmul.msk.bf16.vlgmr.msra.gmra.mxu3 %vm300_vm1, %v632_v9 }
  0xbe   : > { %v326_v10 = vpop.f32.mrf.mxu0  ;;  %v331_v11 = vpop.f32.mrf.mxu1 }
  0xbf   : > { %v376_v14 = vmul.f32 %v326_v10, %v326_v10  ;;  %v378_v21 = vmul.f32 %v331_v11, %v331_v11 }
  0xc5   : > { %v336_v12 = vpop.f32.mrf.mxu2  ;;  %v341_v13 = vpop.f32.mrf.mxu3 }
  0xc6   : > { %v328_v15 = vpop.f32.mrf.mxu0  ;;  %v333_v16 = vpop.f32.mrf.mxu1  ;;  %v380_v27 = vmul.f32 %v336_v12, %v336_v12  ;;  %v382_v37 = vmul.f32 %v341_v13, %v341_v13 }
  0xc7   : > { %v639_v17 = vpack.c.bf16 %v328_v15, %v326_v10  ;;  %v362_v18 = vadd.f32 %v328_v15, %v326_v10  ;;  %v377_v19 = vmul.f32 %v328_v15, %v328_v15  ;;  %v644_v20 = vpack.c.bf16 %v333_v16, %v331_v11 }
  0xc8   : > { %v379_v25 = vmul.f32 %v333_v16, %v333_v16 }
  0xc9   : > { %640 = vst [vmem:[%s238_s26] sm:$0xff] %v639_v17   ;;  %v384_v22 = vadd.f32 %v377_v19, %v376_v14  ;;  %v363_v23 = vadd.f32 %v362_v18, %v331_v11 }
  0xca   : > { %656 = vst [vmem:[%s238_s26 + $0x8] sm:$0xff] %v644_v20  }
  0xcb   : > { %v364_v24 = vadd.f32 %v363_v23, %v333_v16  ;;  %v385_v26 = vadd.f32 %v384_v22, %v378_v21 }
  0xcd   : > { %v386_v28 = vadd.f32 %v385_v26, %v379_v25  ;;  %v338_v29 = vpop.f32.mrf.mxu2  ;;  %v365_v30 = vadd.f32 %v364_v24, %v336_v12  ;;  %v343_v31 = vpop.f32.mrf.mxu3 }
  0xce   : > { %v649_v32 = vpack.c.bf16 %v338_v29, %v336_v12  ;;  %v654_v33 = vpack.c.bf16 %v343_v31, %v341_v13  ;;  %v381_v35 = vmul.f32 %v338_v29, %v338_v29 }
  0xcf   : > { %v366_v34 = vadd.f32 %v365_v30, %v338_v29  ;;  %v387_v36 = vadd.f32 %v386_v28, %v380_v27 }
  0xd0   : > { %657 = vst [vmem:[%s238_s26 + $0x10] sm:$0xff] %v649_v32  }
  0xd1   : > { %v388_v38 = vadd.f32 %v387_v36, %v381_v35  ;;  %658 = vst [vmem:[%s238_s26 + $0x18] sm:$0xff] %v654_v33   ;;  %v367_v39 = vadd.f32 %v366_v34, %v341_v13 }
  0xd2   : > { %826 = shalt.err (!%p823_p10)
}
  0xd3   : > { %s934_s7 = smov 64   ;;  %s935_s21 = smov 4   ;;  %v368_v40 = vadd.f32 %v367_v39, %v343_v31  ;;  %v383_v41 = vmul.f32 %v343_v31, %v343_v31  ;;  %v389_v42 = vadd.f32 %v388_v38, %v382_v37 }
  0xd4   : > { %674 = dma.vmem_to_hbm [thread:$0]  (%p1032_p3), %s1082_s27, 512, %s422_s28, %s399_s6, %s934_s7, %s934_s7, %s935_s21  }
  0xd5   : > { %v369_v43 = vrot.slane %v368_v40, 4  ;;  %v390_v44 = vadd.f32 %v389_v42, %v383_v41  ;;  %s433_s5 = scalar_lea.hbm %s1168_s3, %s982_s19  ;;  %s403_s24 = sand.u32 1, %s982_s19  }
  0xd6   : > { %s446_s27 = scalar_lea.hbm %s1169_s4, %s982_s19  ;;  %s244_s28 = scalar_lea.vmem [#allocation8], %s1062_s10 }
  0xd7   : > { %v370_v45 = vadd.f32 %v369_v43, %v368_v40  ;;  %v391_v46 = vrot.slane %v390_v44, 4  ;;  %s1106_s6 = sshll.u32 %s244_s28, 4  ;;  %s1108_s12 = sshll.u32 %s433_s5, 4  ;;  %s436_s6 = int_to_ptr.vmem [resolvable:$true] %s1106_s6  ;;  %s438_s12 = int_to_ptr.hbm [resolvable:$true] %s1108_s12 }
  0xd8   : > { %s250_s14 = scalar_lea.vmem [#allocation10], %s1062_s10  ;;  %s1113_s20 = sshll.u32 %s446_s27, 4  ;;  %s451_s20 = int_to_ptr.hbm [resolvable:$true] %s1113_s20 }
  0xd9   : > { %v371_v47 = vrot.slane %v370_v45, 2  ;;  %v392_v48 = vadd.f32 %v391_v46, %v390_v44  ;;  %s1111_s23 = sshll.u32 %s250_s14, 4  ;;  %s404_s19 = scalar_lea.sflag [#allocation9], %s403_s24  ;;  %s449_s23 = int_to_ptr.vmem [resolvable:$true] %s1111_s23 }
  0xda   : > { %s841_s25 = sshra.s32 %s438_s12, 4  ;;  %s847_s26 = scalar_lea.hbm %s1168_s3, 2  ;;  %s842_s25 = int_to_ptr.hbm [resolvable:$true] %s841_s25 }
  0xdb   : > { %v372_v49 = vadd.f32 %v371_v47, %v370_v45  ;;  %v393_v50 = vrot.slane %v392_v48, 2  ;;  %s843_s7 = scalar_lea.hbm %s842_s25, 1  ;;  %p848_p5 = scmp.lt.s32.totalorder %s842_s25, %s1168_s3 }
  0xdc   : > { %p844_p12 = scmp.ne.s32.totalorder %s842_s25, %s843_s7  ;;  %p849_p7 = scmp.lt.s32.totalorder %s847_s26, %s843_s7 }
  0xdd   : > { %v373_v51 = vrot.slane %v372_v49, 1  ;;  %v394_v52 = vadd.f32 %v393_v50, %v392_v48 }
  0xde   : > { %p845_p13 = pnand %p844_p12, %p1032_p3  ;;  %p850_p1 = por %p849_p7, %p848_p5 }
  0xdf   : > { %v374_v53 = vadd.f32 %v373_v51, %v372_v49  ;;  %v395_v54 = vrot.slane %v394_v52, 1 }
  0xe0   : > { %p846_p0 = pneg %p845_p13 }
  0xe1   : > { %v396_v55 = vadd.f32 %v395_v54, %v394_v52  ;;  %375 = vst [vmem:[%s244_s28] sm:$0x1] %v374_v53 }
  0xe2   : > { %p851_p4 = pnand %p850_p1, %p846_p0 }
  0xe4   : > { %854 = shalt.err (!%p851_p4)
}
  0xe5   : > { %675 = dma.vmem_to_hbm [thread:$0]  (%p1032_p3), %s436_s6, 16, %s438_s12, %s404_s19   ;;  %397 = vst [vmem:[%s250_s14] sm:$0x1] %v396_v55 }
  0xe6   : > { %s869_s24 = sshra.s32 %s451_s20, 4  ;;  %s875_s28 = scalar_lea.hbm %s1169_s4, 2  ;;  %s870_s24 = int_to_ptr.hbm [resolvable:$true] %s869_s24 }
  0xe7   : > { %s871_s11 = scalar_lea.hbm %s870_s24, 1  ;;  %p876_p2 = scmp.lt.s32.totalorder %s870_s24, %s1169_s4 }
  0xe8   : > { %p872_p8 = scmp.ne.s32.totalorder %s870_s24, %s871_s11  ;;  %p877_p10 = scmp.lt.s32.totalorder %s875_s28, %s871_s11 }
  0xea   : > { %p873_p11 = pnand %p872_p8, %p1032_p3  ;;  %p878_p12 = por %p877_p10, %p876_p2 }
  0xec   : > { %p874_p9 = pneg %p873_p11 }
  0xee   : > { %p879_p13 = pnand %p878_p12, %p874_p9 }
  0xf0   : > { %882 = shalt.err (!%p879_p13)
}
  0xf1   : > { %676 = dma.vmem_to_hbm [thread:$0]  (%p1032_p3), %s449_s23, 16, %s451_s20, %s404_s19  }
  0xf2 PF: > { %s462_s6 = sand.u32 1, %s917_s15   ;;  %p1176_p0 = scmp.ge.s32.totalorder %s929_s18, 2 }
  0xf3   : > { %s463_s12 = scalar_lea.sflag [#allocation4], %s462_s6 }
  0xf4   : > { %p689_p5 = pnand %p1176_p0, %p998_p6 }
  0xf6   : > { %p690_p7 = pneg %p689_p5 }
  0xf8   : > { %908 = dma.done.wait (%p690_p7), %s463_s12, 512  }
  0xf9   : > { %910 = vsyncadd (%p690_p7), %s463_s12, 4294966784  ;;  %s1177_s14 = sadd.s32 4294967294, %s929_s18  }
  0xfa   : > { %s472_s9 = sand.u32 1, %s1177_s14  }
  0xfb   : > { %s473_s10 = scalar_lea.sflag [#allocation9], %s472_s9 }
  0xfc   : > { %912 = dma.done.wait (%p690_p7), %s473_s10, 32  }
  0xfd   : > { %914 = vsyncadd (%p690_p7), %s473_s10, 4294967264  ;;  %p22_p3 = scmp.ge.s32.totalorder %s1016_s29, 4   ;;  %s1178_s15 = smov %s921_s16 }
  0xfe   : > { %s1179_s16 = smov %s925_s17  ;;  %s1180_s17 = smov %s1028_s8 }
  0xff   : > { %s1181_s18 = smov %s1016_s29  ;;  %24 = sbr.rel (!%p22_p3) target bundleno = 8 (0x8), region = 109 }
 0x104   :  { %487 = vsyncpa [#allocation3], 1 }
 0x105   :  { %489 = vsyncpa [#allocation3 + $0x1], 1 }
 0x106   :  { %490 = vsyncpa [#allocation6], 1 }
 0x107   :  { %491 = vsyncpa [#allocation4], 1 }
 0x108   :  { %493 = vsyncpa [#allocation4 + $0x1], 1 }
 0x109   :  { %494 = vsyncpa [#allocation9], 1 }
 0x10a   :  { %496 = vsyncpa [#allocation9 + $0x1], 1 }

</bundles_post_ra>
